<compile_context>
chip_gen: v5e
topology: v5e:2x2
jax: 0.10.0
libtpu: 0.0.40
codegen_flags: <defaults>
</compile_context>

<pallas_src>
import jax
import jax.numpy as jnp
from jax.experimental import pallas as pl
from jax.experimental.pallas import tpu as pltpu


def _round_up(n, m):
    return ((n + m - 1) // m) * m


# ----------------------------- Pallas kernel ------------------------------- #

def _moe_ffn_kernel(route_ref, x_ref, w1_ref, b1_ref, w2_ref, b2_ref, out_ref):
    # route_ref (SMEM scalar prefetch) is consumed by the weight index_maps.
    del route_ref
    x = x_ref[...].astype(w1_ref.dtype)                    # f32 -> bf16 on the VPU
    h = jnp.dot(x, w1_ref[0], preferred_element_type=jnp.float32)
    h = jnp.maximum(h + b1_ref[0], 0.0)                    # bias + ReLU, merged hidden
    y = jnp.dot(h.astype(w2_ref.dtype), w2_ref[0],
                preferred_element_type=jnp.float32)        # implicitly e_out + u_out
    out_ref[...] = (y + b2_ref[0]).astype(out_ref.dtype)


# ------------------------------ host helpers -------------------------------- #

def _vmem_budget_bytes():
    """Per-generation VMEM budget (physical capacity minus safety headroom)."""
    phys = 64 << 20                                     # conservative default (v7x/TC)
    try:
        info = pltpu.get_tpu_info()
        phys = int(getattr(info, "vmem_capacity_bytes", phys)) or phys
    except Exception:
        pass
    if phys >= (128 << 20):
        return 100 << 20                                # v5e / v6e (128 MiB physical)
    return min(48 << 20, (phys * 3) // 4)               # v7x-class (64 MiB physical)


def _vmem_needed_bytes(tm, H, twoP, Hout, x_bytes, out_bytes, w_bytes, weight_bufs):
    x_buf = 2 * tm * H * x_bytes                        # double-buffered x tile
    out_buf = 2 * tm * Hout * out_bytes                 # double-buffered out tile
    w_buf = weight_bufs * (H * twoP + twoP * Hout + twoP + Hout) * w_bytes
    hidden = tm * twoP * (4 + w_bytes)                  # f32 hidden + bf16 copy scratch
    misc = tm * Hout * 4 + (1 << 20)                    # f32 y before store cast + slack
    return x_buf + out_buf + w_buf + hidden + misc


def _pick_rows_tiling(M, per_row_bytes, resident_weight_bytes, vmem_budget):
    """Row tile: VMEM-bounded, MXU-friendly (256-row multiples on the 256-wide
    MXUs when M allows), with >= 2 (even) grid steps for megacore / 2-TC parts."""
    avail = vmem_budget - resident_weight_bytes - (4 << 20)
    tm_cap = max(int(avail // max(per_row_bytes, 1)), 8)
    tm_cap = min(tm_cap, 2048)
    tm_cap = (tm_cap // 256) * 256 if tm_cap >= 256 else max((tm_cap // 8) * 8, 8)
    if M <= 512:
        tm = min(tm_cap, max(8, _round_up(max(M // 2, 1), 8)))   # tiny M: split in two
    else:
        tm = min(tm_cap, 256)
        while tm * 2 <= tm_cap and M // (tm * 2) >= 2:
            tm *= 2
    tm = max(tm, 8)
    grid_m = pl.cdiv(M, tm)
    if M > 512 and grid_m > 2 and grid_m % 2 == 1:               # even TC split
        step = 256 if tm >= 256 else 8
        tm = max(step, _round_up(pl.cdiv(M, grid_m + 1), step))
        grid_m = pl.cdiv(M, tm)
    return tm, grid_m


def build_merged_weights(expert_params, uexpert_params, hidden_units,
                         dtype=jnp.bfloat16):
    """Merge routed-expert + uexpert Conv1d(k=1) weights into two MXU operands
    plus two bias rows.

    expert_params: list of (w1, b1, w2, b2), Conv1d layout (out, in)/(out,), one
      entry per DISTINCT expert weight set (the PyTorch module shares one module
      across all experts, so a single entry suffices).
    uexpert_params: (w1, b1, w2, b2) of the always-on user expert.

    Returns (w1m, b1m, w2m, b2m):
      w1m: (E, H,  2P)   = [W1_e^T | W1_u^T]
      b1m: (E, 1,  2P)   = [b1_e   | b1_u ]
      w2m: (E, 2P, Hout) = [W2_e^T ; W2_u^T]
      b2m: (E, 1,  Hout) =  b2_e + b2_u
    with P = round_up(H, 128) and Hout = H if H % 128 == 0 else round_up(H, 128).
    """
    H = hidden_units
    P = _round_up(H, 128)
    Hout = H if H % 128 == 0 else _round_up(H, 128)
    uw1, ub1, uw2, ub2 = uexpert_params
    w1m_all, b1m_all, w2m_all, b2m_all = [], [], [], []
    for (ew1, eb1, ew2, eb2) in expert_params:
        w1m = jnp.zeros((H, 2 * P), jnp.float32)
        w1m = w1m.at[:, :H].set(ew1.T)               # routed expert, layer 1
        w1m = w1m.at[:, P:P + H].set(uw1.T)          # user expert, layer 1
        b1m = jnp.zeros((1, 2 * P), jnp.float32)
        b1m = b1m.at[0, :H].set(eb1)
        b1m = b1m.at[0, P:P + H].set(ub1)
        w2m = jnp.zeros((2 * P, Hout), jnp.float32)
        w2m = w2m.at[:H, :H].set(ew2.T)              # routed expert, layer 2
        w2m = w2m.at[P:P + H, :H].set(uw2.T)         # user expert, layer 2
        b2m = jnp.zeros((1, Hout), jnp.float32)
        b2m = b2m.at[0, :H].set(eb2 + ub2)           # summed second biases
        w1m_all.append(w1m); b1m_all.append(b1m)
        w2m_all.append(w2m); b2m_all.append(b2m)
    stack = lambda xs: jnp.stack(xs).astype(dtype)
    return stack(w1m_all), stack(b1m_all), stack(w2m_all), stack(b2m_all)


def moe_pointwise_ffn(x, route, w1m, b1m, w2m, b2m, *, tm=None, out_dtype=None):
    """x: (B, T, H); route: int32 (1,); merged operands from build_merged_weights.
    Returns (B, T, H) in out_dtype (defaults to x.dtype for PyTorch parity)."""
    B, T, H = x.shape
    M = B * T
    E, _, twoP = w1m.shape
    Hout = w2m.shape[-1]
    cdtype = w1m.dtype
    out_dtype = x.dtype if out_dtype is None else out_dtype
    x_bytes = jnp.dtype(x.dtype).itemsize
    o_bytes = jnp.dtype(out_dtype).itemsize
    w_bytes = jnp.dtype(cdtype).itemsize

    budget = _vmem_budget_bytes()
    resident_w = (H * twoP + twoP * Hout + twoP + Hout) * w_bytes   # single-buffered
    per_row = 2 * H * x_bytes + 2 * Hout * o_bytes + twoP * (4 + w_bytes) + Hout * 4
    if tm is None:
        tm, grid_m = _pick_rows_tiling(M, per_row, resident_w, budget)
    else:
        grid_m = pl.cdiv(M, tm)

    x2 = x.reshape(M, H)
    # Clamp the routed index to the available merged-weight slots (shared-weight
    # experts are stored once rather than duplicated E times).
    route = jnp.clip(route.reshape(-1)[:1].astype(jnp.int32), 0, E - 1)

    flops = int(2 * M * H * twoP + 2 * M * twoP * Hout)
    bytes_accessed = int(M * H * x_bytes + resident_w + M * Hout * o_bytes)

    def _call(weight_pipeline, weight_bufs):
        wkw = {} if weight_pipeline is None else {"pipeline_mode": weight_pipeline}
        needed = _vmem_needed_bytes(tm, H, twoP, Hout, x_bytes, o_bytes, w_bytes,
                                    weight_bufs)
        vmem_limit = int(min(budget, max(32 << 20, (needed * 3) // 2)))
        return pl.pallas_call(
            _moe_ffn_kernel,
            out_shape=jax.ShapeDtypeStruct((M, Hout), out_dtype),
            grid_spec=pltpu.PrefetchScalarGridSpec(
                num_scalar_prefetch=1,
                grid=(grid_m,),
                in_specs=[
                    pl.BlockSpec((tm, H), lambda i, r: (i, 0)),                   # x tile
                    pl.BlockSpec((1, H, twoP), lambda i, r: (r[0], 0, 0), **wkw),     # W1m
                    pl.BlockSpec((1, 1, twoP), lambda i, r: (r[0], 0, 0), **wkw),     # b1m
                    pl.BlockSpec((1, twoP, Hout), lambda i, r: (r[0], 0, 0), **wkw),  # W2m
                    pl.BlockSpec((1, 1, Hout), lambda i, r: (r[0], 0, 0), **wkw),     # b2m
                ],
                out_specs=pl.BlockSpec((tm, Hout), lambda i, r: (i, 0)),
            ),
            compiler_params=pltpu.CompilerParams(
                dimension_semantics=("parallel",),
                vmem_limit_bytes=vmem_limit,
            ),
            cost_estimate=pl.CostEstimate(flops=flops, transcendentals=0,
                                          bytes_accessed=bytes_accessed),
        )(route, x2, w1m, b1m, w2m, b2m)

    try:
        # Grid-invariant weight operands: single-buffer them to halve resident VMEM.
        out = _call(pl.Buffered(1), 1)
    except Exception:
        # TODO(synk): pipeline_mode=pl.Buffered(1) rejected on this jax version;
        # fall back to default buffering (weights are still DMA'd only once).
        out = _call(None, 2)

    if Hout != H:
        out = out[:, :H]
    return out.reshape(B, T, H)


# ------------------------------ routing glue -------------------------------- #

def compute_route(x_real, user_embedding, switch_ws, switch_bs, client_rep):
    if client_rep == 'con':
        x_input = x_real.reshape(1, -1)
    elif client_rep == 'avg':
        x_input = jnp.mean(jnp.squeeze(x_real), axis=0)
    elif client_rep == 'con_ue':
        x_input = jnp.concatenate([x_real.reshape(1, -1), user_embedding], axis=1)
    elif client_rep == 'avg_ue':
        x_input = jnp.concatenate(
            [jnp.mean(jnp.squeeze(x_real), axis=0)[None, :], user_embedding], axis=1)
    else:
        x_input = x_real
    n = len(switch_ws)
    for idx in range(n):
        x_input = x_input @ switch_ws[idx].T + switch_bs[idx]
        if idx < n - 1:
            x_input = jax.nn.relu(x_input)
    route_prob = jax.nn.softmax(x_input, axis=-1)
    out_prob_max = jnp.max(route_prob, axis=-1)
    routes = jnp.argmax(route_prob, axis=-1).astype(jnp.int32)
    return routes, out_prob_max


def moe_pointwise_feed_forward(x, x_real, user_embedding, params, config):
    # PyTorch routes ONCE per call (routes.item()) and applies that single expert
    # to the whole (B, T) batch; we keep that semantic (no per-row routing).
    routes, out_prob_max = compute_route(
        x_real, user_embedding, params['switch_w'], params['switch_b'],
        config['client_rep'])
    route_arr = jnp.reshape(routes, (-1,))[:1].astype(jnp.int32)
    final = moe_pointwise_ffn(x, route_arr, params['w1m'], params['b1m'],
                              params['w2m'], params['b2m'])
    return final, routes, out_prob_max


# --------------------------------- main ------------------------------------- #

if __name__ == "__main__":
    B, T, H = 2, 8, 32            # batch, maxlen (seq), hidden_units
    E = 3                          # num_experts (routing width)
    switch_hidden_dims = [H, 16, E]
    config = {'client_rep': 'avg'}

    key = jax.random.PRNGKey(0)
    ks = jax.random.split(key, 16)
    s = 0.1

    # One shared expert module (PyTorch reuses the SAME module for all E experts);
    # Conv1d(k=1) weights in (out, in) layout.
    ew1 = jax.random.normal(ks[0], (H, H), jnp.float32) * s
    eb1 = jax.random.normal(ks[1], (H,), jnp.float32) * s
    ew2 = jax.random.normal(ks[2], (H, H), jnp.float32) * s
    eb2 = jax.random.normal(ks[3], (H,), jnp.float32) * s

    # user expert
    uw1 = jax.random.normal(ks[4], (H, H), jnp.float32) * s
    ub1 = jax.random.normal(ks[5], (H,), jnp.float32) * s
    uw2 = jax.random.normal(ks[6], (H, H), jnp.float32) * s
    ub2 = jax.random.normal(ks[7], (H,), jnp.float32) * s

    # Merged, lane-dense bf16 kernel operands. Single slot because experts share
    # weights (the route index is clamped to it); pass E tuples for distinct experts.
    w1m, b1m, w2m, b2m = build_merged_weights([(ew1, eb1, ew2, eb2)],
                                              (uw1, ub1, uw2, ub2), H,
                                              dtype=jnp.bfloat16)

    # switch MLP
    switch_w, switch_b = [], []
    for li, (din, dout) in enumerate(zip(switch_hidden_dims[:-1],
                                         switch_hidden_dims[1:])):
        switch_w.append(jax.random.normal(ks[8 + 2 * li], (dout, din), jnp.float32) * s)
        switch_b.append(jax.random.normal(ks[9 + 2 * li], (dout,), jnp.float32) * s)

    params = {'w1m': w1m, 'b1m': b1m, 'w2m': w2m, 'b2m': b2m,
              'switch_w': switch_w, 'switch_b': switch_b}

    # inputs
    x = jax.random.normal(ks[12], (B, T, H), jnp.float32)
    x_real = jax.random.normal(ks[13], (1, T, H), jnp.float32)
    user_embedding = jax.random.normal(ks[14], (1, H), jnp.float32)

    final, routes, out_prob_max = moe_pointwise_feed_forward(
        x, x_real, user_embedding, params, config)
    final = jax.block_until_ready(final)
    routes_i = int(routes)
    out_prob_max_f = float(out_prob_max)

    # ---------------------------- reference checks -------------------------- #
    # (a) f32 semantics of the PyTorch module (tolerance covers bf16 weights).
    def _pw(x2, w1, b1, w2, b2):
        h = jax.nn.relu(x2 @ w1.T + b1)
        return h @ w2.T + b2

    x2 = x.reshape(B * T, H)
    ref_f32 = (_pw(x2, ew1, eb1, ew2, eb2)
               + _pw(x2, uw1, ub1, uw2, ub2)).reshape(B, T, H)

    # (b) mirror of the exact kernel math (bf16 operands, f32 accumulation).
    slot = 0   # shared-weight demo: clamped route -> slot 0
    xb = x2.astype(w1m.dtype)
    h_ref = jnp.maximum(jnp.dot(xb, w1m[slot], preferred_element_type=jnp.float32)
                        + b1m[slot, 0].astype(jnp.float32), 0.0)
    y_ref = (jnp.dot(h_ref.astype(w1m.dtype), w2m[slot],
                     preferred_element_type=jnp.float32)
             + b2m[slot, 0].astype(jnp.float32))
    ref_mirror = y_ref[:, :H].reshape(B, T, H)

    assert final.shape == (B, T, H)
    assert 0 <= routes_i < E
    assert 0.0 < out_prob_max_f <= 1.0
    assert jnp.allclose(final, ref_mirror, atol=2e-3, rtol=2e-3), \
        "mismatch vs bf16 mirror reference"
    assert jnp.allclose(final, ref_f32, atol=5e-2, rtol=5e-2), \
        "mismatch vs f32 reference"

    print("KERNEL_OK")
</pallas_src>

<mosaic_0001>
module attributes {stable_mosaic.version = 11 : i64} {
  func.func @_moe_ffn_kernel(%arg0: i32, %arg1: memref<1xi32, #tpu.memory_space<smem>>, %arg2: memref<8x32xf32, #tpu.memory_space<vmem>>, %arg3: memref<1x32x256xbf16, #tpu.memory_space<vmem>>, %arg4: memref<1x1x256xbf16, #tpu.memory_space<vmem>>, %arg5: memref<1x256x128xbf16, #tpu.memory_space<vmem>>, %arg6: memref<1x1x128xbf16, #tpu.memory_space<vmem>>, %arg7: memref<8x128xf32, #tpu.memory_space<vmem>>) attributes {dimension_semantics = [#tpu.dimension_semantics<parallel>], iteration_bounds = array<i64: 2>, scalar_prefetch = 1 : i64, scratch_operands = 0 : i64, tpu.core_type = #tpu.core_type<tc>, window_params = [{transform_indices = @transform_0, window_bounds = array<i64: 8, 32>}, {pipeline_mode = #tpu.pipeline_mode<synchronous>, transform_indices = @transform_1, window_bounds = array<i64: 1, 32, 256>}, {pipeline_mode = #tpu.pipeline_mode<synchronous>, transform_indices = @transform_2, window_bounds = array<i64: 1, 1, 256>}, {pipeline_mode = #tpu.pipeline_mode<synchronous>, transform_indices = @transform_3, window_bounds = array<i64: 1, 256, 128>}, {pipeline_mode = #tpu.pipeline_mode<synchronous>, transform_indices = @transform_4, window_bounds = array<i64: 1, 1, 128>}, {transform_indices = @transform_5, window_bounds = array<i64: 8, 128>}]} {
    %c0 = arith.constant 0 : index
    %c0_0 = arith.constant 0 : index
    %0 = vector.load %arg2[%c0, %c0_0] : memref<8x32xf32, #tpu.memory_space<vmem>>, vector<8x32xf32>
    %1 = arith.truncf %0 : vector<8x32xf32> to vector<8x32xbf16>
    %c0_1 = arith.constant 0 : index
    %c0_2 = arith.constant 0 : index
    %c0_3 = arith.constant 0 : index
    %2 = vector.load %arg3[%c0_1, %c0_2, %c0_3] : memref<1x32x256xbf16, #tpu.memory_space<vmem>>, vector<1x32x256xbf16>
    %3 = vector.shape_cast %2 : vector<1x32x256xbf16> to vector<32x256xbf16>
    %cst = arith.constant dense<0.000000e+00> : vector<8x256xf32>
    %4 = tpu.matmul %1, %3, %cst {dimension_numbers = #tpu.dot_dimension_numbers<[1], [0], [0], [1], [0, 0, 1, 1], [], []>} : vector<8x32xbf16>, vector<32x256xbf16>, vector<8x256xf32> -> vector<8x256xf32>
    %c0_4 = arith.constant 0 : index
    %c0_5 = arith.constant 0 : index
    %c0_6 = arith.constant 0 : index
    %5 = vector.load %arg4[%c0_4, %c0_5, %c0_6] : memref<1x1x256xbf16, #tpu.memory_space<vmem>>, vector<1x1x256xbf16>
    %6 = vector.shape_cast %5 : vector<1x1x256xbf16> to vector<1x256xbf16>
    %7 = arith.extf %6 : vector<1x256xbf16> to vector<1x256xf32>
    %8 = vector.broadcast %7 : vector<1x256xf32> to vector<8x256xf32>
    %9 = arith.addf %4, %8 : vector<8x256xf32>
    %cst_7 = arith.constant 0.000000e+00 : f32
    %10 = vector.broadcast %cst_7 : f32 to vector<8x256xf32>
    %11 = arith.maximumf %9, %10 : vector<8x256xf32>
    %12 = arith.truncf %11 : vector<8x256xf32> to vector<8x256xbf16>
    %c0_8 = arith.constant 0 : index
    %c0_9 = arith.constant 0 : index
    %c0_10 = arith.constant 0 : index
    %13 = vector.load %arg5[%c0_8, %c0_9, %c0_10] : memref<1x256x128xbf16, #tpu.memory_space<vmem>>, vector<1x256x128xbf16>
    %14 = vector.shape_cast %13 : vector<1x256x128xbf16> to vector<256x128xbf16>
    %cst_11 = arith.constant dense<0.000000e+00> : vector<8x128xf32>
    %15 = tpu.matmul %12, %14, %cst_11 {dimension_numbers = #tpu.dot_dimension_numbers<[1], [0], [0], [1], [0, 0, 1, 1], [], []>} : vector<8x256xbf16>, vector<256x128xbf16>, vector<8x128xf32> -> vector<8x128xf32>
    %c0_12 = arith.constant 0 : index
    %c0_13 = arith.constant 0 : index
    %c0_14 = arith.constant 0 : index
    %16 = vector.load %arg6[%c0_12, %c0_13, %c0_14] : memref<1x1x128xbf16, #tpu.memory_space<vmem>>, vector<1x1x128xbf16>
    %17 = vector.shape_cast %16 : vector<1x1x128xbf16> to vector<1x128xbf16>
    %18 = arith.extf %17 : vector<1x128xbf16> to vector<1x128xf32>
    %19 = vector.broadcast %18 : vector<1x128xf32> to vector<8x128xf32>
    %20 = arith.addf %15, %19 : vector<8x128xf32>
    %c0_15 = arith.constant 0 : index
    %c0_16 = arith.constant 0 : index
    %21 = vector.load %arg7[%c0_15, %c0_16] : memref<8x128xf32, #tpu.memory_space<vmem>>, vector<8x128xf32>
    tpu.vector_store %arg7[%c0_15, %c0_16], %20 {strides = array<i32>} : memref<8x128xf32, #tpu.memory_space<vmem>>, vector<8x128xf32>,
    return
  }
  func.func @transform_0(%arg0: i32, %arg1: memref<1xi32, #tpu.memory_space<smem>>) -> (i32, i32) {
    %c0_i32 = arith.constant 0 : i32
    %c0_i32_0 = arith.constant 0 : i32
    return %arg0, %c0_i32 : i32, i32
  }
  func.func @transform_1(%arg0: i32, %arg1: memref<1xi32, #tpu.memory_space<smem>>) -> (i32, i32, i32) {
    %c0 = arith.constant 0 : index
    %0 = memref.load %arg1[%c0] : memref<1xi32, #tpu.memory_space<smem>>
    %c0_i32 = arith.constant 0 : i32
    %c0_i32_0 = arith.constant 0 : i32
    %c0_i32_1 = arith.constant 0 : i32
    return %0, %c0_i32, %c0_i32_0 : i32, i32, i32
  }
  func.func @transform_2(%arg0: i32, %arg1: memref<1xi32, #tpu.memory_space<smem>>) -> (i32, i32, i32) {
    %c0 = arith.constant 0 : index
    %0 = memref.load %arg1[%c0] : memref<1xi32, #tpu.memory_space<smem>>
    %c0_i32 = arith.constant 0 : i32
    %c0_i32_0 = arith.constant 0 : i32
    %c0_i32_1 = arith.constant 0 : i32
    return %0, %c0_i32, %c0_i32_0 : i32, i32, i32
  }
  func.func @transform_3(%arg0: i32, %arg1: memref<1xi32, #tpu.memory_space<smem>>) -> (i32, i32, i32) {
    %c0 = arith.constant 0 : index
    %0 = memref.load %arg1[%c0] : memref<1xi32, #tpu.memory_space<smem>>
    %c0_i32 = arith.constant 0 : i32
    %c0_i32_0 = arith.constant 0 : i32
    %c0_i32_1 = arith.constant 0 : i32
    return %0, %c0_i32, %c0_i32_0 : i32, i32, i32
  }
  func.func @transform_4(%arg0: i32, %arg1: memref<1xi32, #tpu.memory_space<smem>>) -> (i32, i32, i32) {
    %c0 = arith.constant 0 : index
    %0 = memref.load %arg1[%c0] : memref<1xi32, #tpu.memory_space<smem>>
    %c0_i32 = arith.constant 0 : i32
    %c0_i32_0 = arith.constant 0 : i32
    %c0_i32_1 = arith.constant 0 : i32
    return %0, %c0_i32, %c0_i32_0 : i32, i32, i32
  }
  func.func @transform_5(%arg0: i32, %arg1: memref<1xi32, #tpu.memory_space<smem>>) -> (i32, i32) {
    %c0_i32 = arith.constant 0 : i32
    %c0_i32_0 = arith.constant 0 : i32
    return %arg0, %c0_i32 : i32, i32
  }
}

module attributes {stable_mosaic.version = 11 : i64} {
  func.func @_moe_ffn_kernel(%arg0: i32, %arg1: memref<1xi32, #tpu.memory_space<smem>>, %arg2: memref<8x32xf32, #tpu.memory_space<vmem>>, %arg3: memref<1x32x256xbf16, #tpu.memory_space<vmem>>, %arg4: memref<1x1x256xbf16, #tpu.memory_space<vmem>>, %arg5: memref<1x256x128xbf16, #tpu.memory_space<vmem>>, %arg6: memref<1x1x128xbf16, #tpu.memory_space<vmem>>, %arg7: memref<8x128xf32, #tpu.memory_space<vmem>>) attributes {dimension_semantics = [#tpu.dimension_semantics<parallel>], iteration_bounds = array<i64: 2>, scalar_prefetch = 1 : i64, scratch_operands = 0 : i64, tpu.core_type = #tpu.core_type<tc>, window_params = [{transform_indices = @transform_0, window_bounds = array<i64: 8, 32>}, {transform_indices = @transform_1, window_bounds = array<i64: 1, 32, 256>}, {transform_indices = @transform_2, window_bounds = array<i64: 1, 1, 256>}, {transform_indices = @transform_3, window_bounds = array<i64: 1, 256, 128>}, {transform_indices = @transform_4, window_bounds = array<i64: 1, 1, 128>}, {transform_indices = @transform_5, window_bounds = array<i64: 8, 128>}]} {
    %c0 = arith.constant 0 : index
    %c0_0 = arith.constant 0 : index
    %0 = vector.load %arg2[%c0, %c0_0] : memref<8x32xf32, #tpu.memory_space<vmem>>, vector<8x32xf32>
    %1 = arith.truncf %0 : vector<8x32xf32> to vector<8x32xbf16>
    %c0_1 = arith.constant 0 : index
    %c0_2 = arith.constant 0 : index
    %c0_3 = arith.constant 0 : index
    %2 = vector.load %arg3[%c0_1, %c0_2, %c0_3] : memref<1x32x256xbf16, #tpu.memory_space<vmem>>, vector<1x32x256xbf16>
    %3 = vector.shape_cast %2 : vector<1x32x256xbf16> to vector<32x256xbf16>
    %cst = arith.constant dense<0.000000e+00> : vector<8x256xf32>
    %4 = tpu.matmul %1, %3, %cst {dimension_numbers = #tpu.dot_dimension_numbers<[1], [0], [0], [1], [0, 0, 1, 1], [], []>} : vector<8x32xbf16>, vector<32x256xbf16>, vector<8x256xf32> -> vector<8x256xf32>
    %c0_4 = arith.constant 0 : index
    %c0_5 = arith.constant 0 : index
    %c0_6 = arith.constant 0 : index
    %5 = vector.load %arg4[%c0_4, %c0_5, %c0_6] : memref<1x1x256xbf16, #tpu.memory_space<vmem>>, vector<1x1x256xbf16>
    %6 = vector.shape_cast %5 : vector<1x1x256xbf16> to vector<1x256xbf16>
    %7 = arith.extf %6 : vector<1x256xbf16> to vector<1x256xf32>
    %8 = vector.broadcast %7 : vector<1x256xf32> to vector<8x256xf32>
    %9 = arith.addf %4, %8 : vector<8x256xf32>
    %cst_7 = arith.constant 0.000000e+00 : f32
    %10 = vector.broadcast %cst_7 : f32 to vector<8x256xf32>
    %11 = arith.maximumf %9, %10 : vector<8x256xf32>
    %12 = arith.truncf %11 : vector<8x256xf32> to vector<8x256xbf16>
    %c0_8 = arith.constant 0 : index
    %c0_9 = arith.constant 0 : index
    %c0_10 = arith.constant 0 : index
    %13 = vector.load %arg5[%c0_8, %c0_9, %c0_10] : memref<1x256x128xbf16, #tpu.memory_space<vmem>>, vector<1x256x128xbf16>
    %14 = vector.shape_cast %13 : vector<1x256x128xbf16> to vector<256x128xbf16>
    %cst_11 = arith.constant dense<0.000000e+00> : vector<8x128xf32>
    %15 = tpu.matmul %12, %14, %cst_11 {dimension_numbers = #tpu.dot_dimension_numbers<[1], [0], [0], [1], [0, 0, 1, 1], [], []>} : vector<8x256xbf16>, vector<256x128xbf16>, vector<8x128xf32> -> vector<8x128xf32>
    %c0_12 = arith.constant 0 : index
    %c0_13 = arith.constant 0 : index
    %c0_14 = arith.constant 0 : index
    %16 = vector.load %arg6[%c0_12, %c0_13, %c0_14] : memref<1x1x128xbf16, #tpu.memory_space<vmem>>, vector<1x1x128xbf16>
    %17 = vector.shape_cast %16 : vector<1x1x128xbf16> to vector<1x128xbf16>
    %18 = arith.extf %17 : vector<1x128xbf16> to vector<1x128xf32>
    %19 = vector.broadcast %18 : vector<1x128xf32> to vector<8x128xf32>
    %20 = arith.addf %15, %19 : vector<8x128xf32>
    %c0_15 = arith.constant 0 : index
    %c0_16 = arith.constant 0 : index
    %21 = vector.load %arg7[%c0_15, %c0_16] : memref<8x128xf32, #tpu.memory_space<vmem>>, vector<8x128xf32>
    tpu.vector_store %arg7[%c0_15, %c0_16], %20 {strides = array<i32>} : memref<8x128xf32, #tpu.memory_space<vmem>>, vector<8x128xf32>,
    return
  }
  func.func @transform_0(%arg0: i32, %arg1: memref<1xi32, #tpu.memory_space<smem>>) -> (i32, i32) {
    %c0_i32 = arith.constant 0 : i32
    %c0_i32_0 = arith.constant 0 : i32
    return %arg0, %c0_i32 : i32, i32
  }
  func.func @transform_1(%arg0: i32, %arg1: memref<1xi32, #tpu.memory_space<smem>>) -> (i32, i32, i32) {
    %c0 = arith.constant 0 : index
    %0 = memref.load %arg1[%c0] : memref<1xi32, #tpu.memory_space<smem>>
    %c0_i32 = arith.constant 0 : i32
    %c0_i32_0 = arith.constant 0 : i32
    %c0_i32_1 = arith.constant 0 : i32
    return %0, %c0_i32, %c0_i32_0 : i32, i32, i32
  }
  func.func @transform_2(%arg0: i32, %arg1: memref<1xi32, #tpu.memory_space<smem>>) -> (i32, i32, i32) {
    %c0 = arith.constant 0 : index
    %0 = memref.load %arg1[%c0] : memref<1xi32, #tpu.memory_space<smem>>
    %c0_i32 = arith.constant 0 : i32
    %c0_i32_0 = arith.constant 0 : i32
    %c0_i32_1 = arith.constant 0 : i32
    return %0, %c0_i32, %c0_i32_0 : i32, i32, i32
  }
  func.func @transform_3(%arg0: i32, %arg1: memref<1xi32, #tpu.memory_space<smem>>) -> (i32, i32, i32) {
    %c0 = arith.constant 0 : index
    %0 = memref.load %arg1[%c0] : memref<1xi32, #tpu.memory_space<smem>>
    %c0_i32 = arith.constant 0 : i32
    %c0_i32_0 = arith.constant 0 : i32
    %c0_i32_1 = arith.constant 0 : i32
    return %0, %c0_i32, %c0_i32_0 : i32, i32, i32
  }
  func.func @transform_4(%arg0: i32, %arg1: memref<1xi32, #tpu.memory_space<smem>>) -> (i32, i32, i32) {
    %c0 = arith.constant 0 : index
    %0 = memref.load %arg1[%c0] : memref<1xi32, #tpu.memory_space<smem>>
    %c0_i32 = arith.constant 0 : i32
    %c0_i32_0 = arith.constant 0 : i32
    %c0_i32_1 = arith.constant 0 : i32
    return %0, %c0_i32, %c0_i32_0 : i32, i32, i32
  }
  func.func @transform_5(%arg0: i32, %arg1: memref<1xi32, #tpu.memory_space<smem>>) -> (i32, i32) {
    %c0_i32 = arith.constant 0 : i32
    %c0_i32_0 = arith.constant 0 : i32
    return %arg0, %c0_i32 : i32, i32
  }
}

</mosaic_0001>

<bundles_post_ra>
// kernel: tpu_custom_call.1
= control target key start
LH: loop header
LB: loop body
LE: loop exit
PB: predicated region body
PF: predicated region fallthrough
CT: control target
= control target key end

     0   :  { %s1425_s0 = inlined_call_operand.<no memory space> [shape: s32[1], index: 0, kind: input, shape index: {}]   ;;  %s1426_s1 = inlined_call_operand.hbm [shape: f32[16,32], index: 1, kind: input, shape index: {}]   ;;  %s1427_s2 = inlined_call_operand.hbm [shape: bf16[1,32,256], index: 2, kind: input, shape index: {}]   ;;  %s1428_s3 = inlined_call_operand.vmem [shape: bf16[1,1,256], index: 3, kind: input, shape index: {}]   ;;  %s1429_s4 = inlined_call_operand.hbm [shape: bf16[1,256,128], index: 4, kind: input, shape index: {}]   ;;  %s1430_s5 = inlined_call_operand.vmem [shape: bf16[1,1,128], index: 5, kind: input, shape index: {}]   ;;  %s1431_s6 = inlined_call_operand.hbm [shape: f32[16,128], index: 6, kind: output, shape index: {}]  }
   0x1   :  { %1436 = sst [smem:[#allocation17_spill]] %s1427_s2 }
   0x2   :  { %1437 = sst [smem:[#allocation18_spill]] %s1431_s6 }
   0x3   :  { %11 = sst [smem:[#allocation3]] %s1425_s0 }
   0x4   :  { %12 = vsyncpa [#allocation5], 0 }
   0x5   :  { %14 = vsyncpa [#allocation5 + $0x1], 0 }
   0x6   :  { %15 = vsyncpa [#allocation8], 0 }
   0x7   :  { %16 = vsyncpa [#allocation6], 0 }
   0x8   :  { %18 = vsyncpa [#allocation6 + $0x1], 0  ;;  %s1192_s23 = smov 0   ;;  %s1194_s24 = smov 0  }
   0x9   :  { %s1196_s25 = smov 0   ;;  %s1198_s26 = smov 0  }
   0xa   :  { %s1200_s27 = smov 0   ;;  %s1202_s28 = smov 0  }
   0xb   :  { %s1204_s29 = smov 0   ;;  %s1206_s0 = smov 0  }
   0xc LB: > { %1438 = sst [smem:[#allocation15_spill]] %s1122_s24  ;;  %s1229_s30 = sadd.s32 4294967295, %s1146_s0   ;;  %s1146_s0 = sphi %s1206_s0, %s1460_s0   ;;  %s1142_s29 = sphi %s1204_s29, %s1459_s29   ;;  %s1138_s28 = sphi %s1202_s28, %s1458_s28   ;;  %s1134_s27 = sphi %s1200_s27, %s1457_s27   ;;  %s1130_s26 = sphi %s1198_s26, %s1411_s26   ;;  %s1126_s25 = sphi %s1196_s25, %s1456_s25   ;;  %s1122_s24 = sphi %s1194_s24, %s1406_s24   ;;  %s1118_s23 = sphi %s1192_s23, %s1455_s23  }
   0xd   : > { %1439 = sst [smem:[#allocation16_spill]] %s1130_s26  ;;  %p1432_p0 = scmp.eq.s32.totalorder %s1229_s30, 0 }
   0xe   : > { %s1231_s7 = sld [smem:[#allocation3]]  ;;  %p72_p1 = scmp.ne.s32.totalorder %s1130_s26, %s1126_s25 }
   0xf   : > { %p128_p2 = scmp.ne.s32.totalorder %s1122_s24, %s1118_s23  ;;  %p711_p3 = scmp.ge.s32.totalorder %s1146_s0, 1 }
  0x10   : > { %p1239_p4 = por %p72_p1, %p1432_p0  ;;  %p193_p5 = scmp.lt.s32.totalorder %s1146_s0, 3 }
  0x11   : > { %p1246_p6 = por %p128_p2, %p1432_p0  ;;  %s1443_s2 = sld [smem:[#allocation17_spill]] }
  0x12   : > { %p1250_p7 = pnand %p711_p3, %p193_p5  ;;  %s1148_s16 = smov [#allocation7]  }
  0x13   : > { %s210_s17 = sshll.u32 %s1148_s16, 4  ;;  %s211_s17 = int_to_ptr.vmem [resolvable:$true] %s210_s17 }
  0x14   : > { %s809_s11 = sshll.u32 %s1231_s7, 5  ;;  %p839_p8 = pneg %p1250_p7 }
  0x16   : > { %p1262_p9 = pnand %p839_p8, %p1239_p4  ;;  %p1268_p10 = pnand %p839_p8, %p1246_p6 }
  0x17   : > { %s207_s14 = scalar_lea.hbm %s1443_s2, %s809_s11  ;;  %s949_s25 = scalar_lea.hbm %s1443_s2, 32 }
  0x18   : > { %s208_s15 = sshll.u32 %s207_s14, 4  ;;  %p946_p13 = pneg %p1262_p9  ;;  %s209_s15 = int_to_ptr.hbm [resolvable:$true] %s208_s15 }
  0x19   : > { %s942_s20 = sshra.s32 %s209_s15, 4  ;;  %s943_s20 = int_to_ptr.hbm [resolvable:$true] %s942_s20 }
  0x1a   : > { %s944_s21 = scalar_lea.hbm %s943_s20, 32  ;;  %p950_p3 = scmp.lt.s32.totalorder %s943_s20, %s1443_s2 }
  0x1b   : > { %p945_p12 = scmp.ne.s32.totalorder %s943_s20, %s944_s21  ;;  %p951_p5 = scmp.lt.s32.totalorder %s949_s25, %s944_s21 }
  0x1d   : > { %p947_p1 = pnand %p946_p13, %p945_p12  ;;  %p952_p8 = por %p951_p5, %p950_p3 }
  0x1f   : > { %p948_p2 = pneg %p947_p1 }
  0x21   : > { %p953_p0 = pnand %p952_p8, %p948_p2 }
  0x23   : > { %956 = shalt.err (!%p953_p0)
}
  0x24   : > { %s1149_s13 = smov 128   ;;  %s1150_s14 = smov 8  }
  0x25   : > { %842 = dma.hbm_to_vmem [thread:$0]  (!%p1262_p9), %s209_s15, 512, %s211_s17, [#allocation8], %s1149_s13, %s1149_s13, %s1150_s14  }
  0x26   : > { %s810_s16 = sshll.u32 %s1231_s7, 7  ;;  %s1151_s6 = smov [#allocation9]  }
  0x27   : > { %s234_s22 = scalar_lea.hbm %s1429_s4, %s810_s16  ;;  %s237_s11 = sshll.u32 %s1151_s6, 4  ;;  %s238_s11 = int_to_ptr.vmem [resolvable:$true] %s237_s11 }
  0x28   : > { %s235_s23 = sshll.u32 %s234_s22, 4  ;;  %p976_p12 = pneg %p1268_p10  ;;  %s236_s23 = int_to_ptr.hbm [resolvable:$true] %s235_s23 }
  0x29   : > { %s972_s20 = sshra.s32 %s236_s23, 4  ;;  %s979_s7 = scalar_lea.hbm %s1429_s4, 128  ;;  %s973_s20 = int_to_ptr.hbm [resolvable:$true] %s972_s20 }
  0x2a   : > { %s974_s21 = scalar_lea.hbm %s973_s20, 128  ;;  %p980_p9 = scmp.lt.s32.totalorder %s973_s20, %s1429_s4 }
  0x2b   : > { %p975_p0 = scmp.ne.s32.totalorder %s973_s20, %s974_s21  ;;  %p981_p2 = scmp.lt.s32.totalorder %s979_s7, %s974_s21 }
  0x2d   : > { %p977_p13 = pnand %p976_p12, %p975_p0  ;;  %p982_p3 = por %p981_p2, %p980_p9 }
  0x2f   : > { %p978_p1 = pneg %p977_p13 }
  0x31   : > { %p983_p5 = pnand %p982_p3, %p978_p1 }
  0x33   : > { %986 = shalt.err (!%p983_p5)
}
  0x34   : > { %s1152_s6 = smov 64   ;;  %s1153_s26 = smov 4  }
  0x35   : > { %845 = dma.hbm_to_vmem [thread:$0]  (!%p1268_p10), %s236_s23, 2048, %s238_s11, [#allocation8], %s1152_s6, %s1152_s6, %s1153_s26  }
  0x36   : > { %s710_s25 = sadd.s32 4294967294, %s1146_s0   ;;  %s1299_s12 = sadd.s32 1, %s1146_s0  }
  0x37   : > { %s28_s13 = ssub.s32 %s1146_s0, %s1299_s12  ;;  %s31_s14 = sadd.s32 1, %s1142_s29 }
  0x38   : > { %p29_p8 = scmp.eq.s32.totalorder %s28_s13, 0  ;;  %p38_p0 = scmp.ne.s32.totalorder %s1142_s29, %s1138_s28 }
  0x39   : > { %p39_p12 = scmp.eq.s32.totalorder %s1146_s0, 0  ;;  %p44_p13 = scmp.ne.s32.totalorder %s1138_s28, %s1134_s27 }
  0x3a   : > { %s1310_s16 = scalar_select %p29_p8, %s1142_s29, %s31_s14  }
  0x3b   : > { %p1312_p1 = por %p39_p12, %p38_p0  ;;  %p1447_p9 = scmp.eq.s32.totalorder %s1229_s30, 0 }
  0x3c   : > { %p180_p2 = scmp.eq.s32.totalorder %s1229_s30, 1  ;;  %p186_p3 = scmp.eq.s32.totalorder %s710_s25, 1 }
  0x3d   : > { %p1318_p10 = por %p1447_p9, %p44_p13  ;;  %p854_p5 = scmp.lt.s32.totalorder %s1146_s0, 2 }
  0x3e   : > { %s259_s23 = sand.u32 1, %s1142_s29   ;;  %p1325_p11 = por %p180_p2, %p38_p0 }
  0x3f   : > { %p1329_p8 = por %p186_p3, %p44_p13  ;;  %s717_s21 = sshll.u32 %s259_s23, 3 }
  0x40   : > { %s718_s18 = sshll.u32 %s1146_s0, 3  ;;  %s263_s24 = scalar_lea.vmem [#allocation4], %s717_s21 }
  0x41   : > { %s1450_s20 = scalar_select %p1329_p8, 1, 0 }
  0x42   : > { %s267_s17 = scalar_lea.hbm %s1426_s1, %s718_s18  ;;  %s271_s6 = sshll.u32 %s263_s24, 4  ;;  %s272_s6 = int_to_ptr.vmem [resolvable:$true] %s271_s6 }
  0x43   : > { %s269_s26 = sshll.u32 %s267_s17, 4  ;;  %p1339_p0 = pnand %p854_p5, %p1312_p1  ;;  %s270_s26 = int_to_ptr.hbm [resolvable:$true] %s269_s26 }
  0x44   : > { %s260_s13 = scalar_lea.sflag [#allocation5], %s259_s23  ;;  %s1002_s14 = sshra.s32 %s270_s26, 4  ;;  %s1003_s14 = int_to_ptr.hbm [resolvable:$true] %s1002_s14 }
  0x45   : > { %s1004_s2 = scalar_lea.hbm %s1003_s14, 8  ;;  %p1006_p13 = pneg %p1339_p0 }
  0x46   : > { %p1005_p12 = scmp.ne.s32.totalorder %s1003_s14, %s1004_s2  ;;  %s1009_s15 = scalar_lea.hbm %s1426_s1, 16 }
  0x47   : > { %p1010_p1 = scmp.lt.s32.totalorder %s1003_s14, %s1426_s1  ;;  %p1011_p3 = scmp.lt.s32.totalorder %s1009_s15, %s1004_s2 }
  0x48   : > { %p1007_p9 = pnand %p1006_p13, %p1005_p12 }
  0x49   : > { %p1012_p5 = por %p1011_p3, %p1010_p1 }
  0x4a   : > { %p1008_p2 = pneg %p1007_p9 }
  0x4c   : > { %p1013_p8 = pnand %p1012_p5, %p1008_p2 }
  0x4e   : > { %1016 = shalt.err (!%p1013_p8)
}
  0x4f   : > { %849 = dma.hbm_to_vmem [thread:$0]  (!%p1339_p0), %s270_s26, 128, %s272_s6, %s260_s13  }
  0x50   : > { %280 = sbr.rel (%p1250_p7) target bundleno = 373 (0x175), region = 40  ;;  %s1356_s23 = sand.u32 (!%p1250_p7), 1, %s1138_s28  }
  0x51   : > { %s720_s17 = sshll.u32 (!%p1250_p7), %s1356_s23, 3  ;;  %s283_s24 = scalar_lea.sflag (!%p1250_p7), [#allocation5], %s1356_s23 }
  0x52   : > { %s286_s2 = scalar_lea.vmem (!%p1250_p7), [#allocation4], %s720_s17 }
  0x55   : > { %1101 = dma.done.wait (%p1318_p10), %s283_s24, 128  }
  0x56   : > { %1103 = vsyncadd (%p1318_p10), %s283_s24, 4294967168 }
  0x57   : > { %1105 = dma.done.wait (%p1239_p4), [#allocation8], 512  }
  0x58   : > { %1107 = vsyncadd (%p1239_p4), [#allocation8], 4294966784 }
  0x59   : > { %1109 = dma.done.wait (%p1246_p6), [#allocation8], 2048  }
  0x5a   : > { %1111 = vsyncadd (%p1246_p6), [#allocation8], 4294965248  ;;  %v733_v0 = vld [vmem:[#allocation7 + $0x10] sm:$0xf]  ;;  %v814_v1 = vld [vmem:[#allocation7 + $0x14] sm:$0xf0] }
  0x5b   : > { %v813_v2 = vld [vmem:[#allocation7 + $0x14] sm:$0xf]  ;;  %v734_v3 = vor.u32 %v814_v1, %v733_v0  ;;  %v735_v4 = vld [vmem:[#allocation7 + $0x18] sm:$0xf0]  ;;  %v725_v5 = vld [vmem:[#allocation7] sm:$0xf] }
  0x5c   : > { %v812_v6 = vld [vmem:[#allocation7 + $0x4] sm:$0xf0]  ;;  %v738_v7 = vor.u32 %v813_v2, %v735_v4  ;;  %v811_v8 = vld [vmem:[#allocation7 + $0x4] sm:$0xf]  ;;  %v727_v9 = vld [vmem:[#allocation7 + $0x8] sm:$0xf0] }
  0x5d   : > { %392 = vmatpush.bf16.msra.mxu0 %v734_v3  ;;  %v726_v10 = vor.u32 %v812_v6, %v725_v5  ;;  %v347_v11 = vld [vmem:[%s286_s2] sm:$0xff]  ;;  %v730_v14 = vor.u32 %v811_v8, %v727_v9  ;;  %vm382_vm0 = vcmask 261120   ;;  %v820_v18 = vld [vmem:[#allocation9 + $0x28] sm:$0xff]  ;;  %v819_v20 = vld [vmem:[#allocation9 + $0x20] sm:$0xff]  ;;  %s334_s8 = sld [smem:[#allocation3]]  ;;  %s806_s14 = sshll.u32 %s1229_s30, 3 }
  0x5e   : > { %v822_v12 = vld [vmem:[#allocation9 + $0x38] sm:$0xff]  ;;  %405 = vmatpush.bf16.msra.mxu1 %v738_v7  ;;  %v821_v15 = vld [vmem:[#allocation9 + $0x30] sm:$0xff]  ;;  %v348_v17 = vpack.c.bf16 %v347_v11, %v347_v11  ;;  %v828_v19 = vld [vmem:[#allocation9 + $0x68] sm:$0xff]  ;;  %s1452_s15 = sld [smem:[#allocation18_spill]]  ;;  %s332_s22 = scalar_lea.vmem [#allocation10], %s720_s17 }
  0x5f   : > { %v830_v13 = vld [vmem:[#allocation9 + $0x78] sm:$0xff]  ;;  %547 = vmatpush.bf16.msra.mxu2 %v822_v12  ;;  %v829_v16 = vld [vmem:[#allocation9 + $0x70] sm:$0xff]  ;;  %v827_v21 = vld [vmem:[#allocation9 + $0x60] sm:$0xff]  ;;  %s587_s24 = sshll.u32 %s332_s22, 4  ;;  %s588_s24 = int_to_ptr.vmem [resolvable:$true] %s587_s24 }
  0x60   : > { %560 = vmatpush.bf16.msra.mxu3 %v830_v13  ;;  %v818_v22 = vld [vmem:[#allocation9 + $0x18] sm:$0xff]  ;;  %v817_v24 = vld [vmem:[#allocation9 + $0x10] sm:$0xff]  ;;  %v816_v26 = vld [vmem:[#allocation9 + $0x8] sm:$0xff] }
  0x61   : > { %393 = vmatpush.bf16.msra.mxu0 %v726_v10  ;;  %v826_v23 = vld [vmem:[#allocation9 + $0x58] sm:$0xff]  ;;  %v825_v25 = vld [vmem:[#allocation9 + $0x50] sm:$0xff]  ;;  %v824_v27 = vld [vmem:[#allocation9 + $0x48] sm:$0xff] }
  0x62   : > { %406 = vmatpush.bf16.msra.mxu1 %v730_v14  ;;  %v815_v28 = vld [vmem:[#allocation9] sm:$0xff] }
  0x63   : > { %548 = vmatpush.bf16.msra.mxu2 %v821_v15  ;;  %v823_v29 = vld [vmem:[#allocation9 + $0x40] sm:$0xff]  ;;  %p335_p4 = scmp.lt.s32.totalorder %s334_s8, 0 }
  0x64   : > { %561 = vmatpush.bf16.msra.mxu3 %v829_v16  ;;  %739 = vmatmul.msk.bf16.vlgmr.msra.gmra.mxu0 %vm382_vm0, %v348_v17  ;;  %s585_s7 = scalar_lea.hbm %s1452_s15, %s806_s14  ;;  %s1052_s17 = scalar_lea.hbm %s1452_s15, 16 }
  0x65   : > { %740 = vmatmul.msk.bf16.vlgmr.msra.gmra.mxu1 %vm382_vm0, %v348_v17  ;;  %s1462_s8 = smov (!%p335_p4, %s334_s8), 0  ;;  %s589_s2 = sshll.u32 %s585_s7, 4  ;;  %s590_s2 = int_to_ptr.hbm [resolvable:$true] %s589_s2 }
  0x66   : > { %s722_s9 = sshll.u32 %s1462_s8, 1  ;;  %s344_s13 = scalar_lea.vmem %s1430_s5, %s1462_s8 }
  0x67   : > { %549 = vmatpush.bf16.msra.mxu2 %v820_v18  ;;  %s338_s6 = scalar_lea.vmem %s1428_s3, %s722_s9  ;;  %v448_v46 = vld [vmem:[%s344_s13] sm:$0x1]  ;;  %s575_s8 = scalar_lea.sflag [#allocation6], %s1356_s23 }
  0x68   : > { %562 = vmatpush.bf16.msra.mxu3 %v828_v19  ;;  %v353_v30 = vld [vmem:[%s338_s6] sm:$0x3]  ;;  %v449_v47 = vunpack.c.l.bf16 %v448_v46  ;;  %s1046_s9 = sshra.s32 %s590_s2, 4  ;;  %s1047_s9 = int_to_ptr.hbm [resolvable:$true] %s1046_s9 }
  0x69   : > { %v354_v31 = vunpack.c.l.bf16 %v353_v30  ;;  %s1048_s30 = scalar_lea.hbm %s1047_s9, 8  ;;  %p1053_p8 = scmp.lt.s32.totalorder %s1047_s9, %s1452_s15 }
  0x6a   : > { %v450_v48 = vperm.slane %v449_v47, 0  ;;  %p1049_p6 = scmp.ne.s32.totalorder %s1047_s9, %s1048_s30  ;;  %p1054_p0 = scmp.lt.s32.totalorder %s1052_s17, %s1048_s30 }
  0x6b   : > { %550 = vmatpush.bf16.msra.mxu2 %v819_v20  ;;  %v356_v32 = vperm.slane %v354_v31, 0  ;;  %v357_v33 = vperm.slane %v354_v31, 2 }
  0x6c   : > { %563 = vmatpush.bf16.msra.mxu3 %v827_v21  ;;  %p1050_p7 = pnand %p1049_p6, %p1325_p11  ;;  %p1055_p12 = por %p1054_p0, %p1053_p8 }
  0x6d   : > { %v360_v34 = vperm.slane %v356_v32, 0  ;;  %v361_v35 = vperm.slane %v357_v33, 0 }
  0x6e   : > { %p1051_p10 = pneg %p1050_p7 }
  0x6f   : > { %551 = vmatpush.bf16.msra.mxu2 %v818_v22 }
  0x70   : > { %564 = vmatpush.bf16.msra.mxu3 %v826_v23  ;;  %p1056_p13 = pnand %p1055_p12, %p1051_p10 }
  0x73   : > { %552 = vmatpush.bf16.msra.mxu2 %v817_v24 }
  0x74   : > { %565 = vmatpush.bf16.msra.mxu3 %v825_v25 }
  0x77   : > { %553 = vmatpush.bf16.msra.mxu2 %v816_v26 }
  0x78   : > { %566 = vmatpush.bf16.msra.mxu3 %v824_v27 }
  0x7b   : > { %554 = vmatpush.bf16.msra.mxu2 %v815_v28 }
  0x7c   : > { %567 = vmatpush.bf16.msra.mxu3 %v823_v29 }
  0xe1   : > { %v395_v36 = vpop.f32.mrf.mxu0 }
  0xe2   : > { %v396_v37 = vadd.f32 %v395_v36, %v360_v34  ;;  %v408_v38 = vpop.f32.mrf.mxu1 }
  0xe3   : > { %v409_v39 = vadd.f32 %v408_v38, %v361_v35 }
  0xe4   : > { %v412_v40 = vmax.f32 %v396_v37, 0.0 }
  0xe5   : > { %v413_v41 = vmax.f32 %v409_v39, 0.0 }
  0xe6   : > { %v414_v42 = vpack.c.bf16 %v412_v40, %v412_v40 }
  0xe7   : > { %v415_v43 = vpack.c.bf16 %v413_v41, %v413_v41 }
  0xe8   : > { %555 = vmatmul.bf16.vlgmr.msra.gmra.mxu2 %v414_v42 }
  0xe9   : > { %568 = vmatmul.bf16.vlgmr.msra.gmra.mxu3 %v415_v43  ;;  %v397_v44 = vpop.f32.mrf.mxu0 }
  0xea   : > { %v410_v45 = vpop.f32.mrf.mxu1 }
 0x16b   : > { %v556_v49 = vpop.f32.mrf.mxu2 }
 0x16c   : > { %v557_v50 = vadd.f32 %v556_v49, %v450_v48  ;;  %v569_v51 = vpop.f32.mrf.mxu3 }
 0x16e   : > { %v570_v52 = vadd.f32 %v569_v51, %v557_v50 }
 0x170   : > { %573 = vst [vmem:[%s332_s22] sm:$0xff] %v570_v52 }
 0x171   : > { %1059 = shalt.err (!%p1056_p13)
}
 0x172   : > { %837 = dma.vmem_to_hbm [thread:$0]  (%p1325_p11), %s588_s24, 128, %s590_s2, %s575_s8  }
 0x173   : > { %v558_v53 = vpop.f32.mrf.mxu2 }
 0x174   : > { %v571_v54 = vpop.f32.mrf.mxu3 }
 0x175 PF: > { %s601_s23 = sand.u32 1, %s1134_s27   ;;  %p1453_p9 = scmp.ne.s32.totalorder %s1450_s20, 0 }
 0x176   : > { %p1454_p2 = scmp.ge.s32.totalorder %s1146_s0, 2  ;;  %s602_s25 = scalar_lea.sflag [#allocation6], %s601_s23 }
 0x178   : > { %p851_p1 = pnand %p1454_p2, %p1453_p9 }
 0x17a   : > { %p852_p3 = pneg %p851_p1 }
 0x17c   : > { %1113 = dma.done.wait (%p852_p3), %s602_s25, 128  }
 0x17d   : > { %1115 = vsyncadd (%p852_p3), %s602_s25, 4294967168  ;;  %s1455_s23 = sld [smem:[#allocation15_spill]]  ;;  %p21_p11 = scmp.ge.s32.totalorder %s1299_s12, 4  }
 0x17e   : > { %s1456_s25 = sld [smem:[#allocation16_spill]]  ;;  %s1406_s24 = smov 0  }
 0x17f   : > { %s1411_s26 = smov 0   ;;  %s1457_s27 = smov %s1138_s28 }
 0x180   : > { %s1458_s28 = smov %s1142_s29  ;;  %s1459_s29 = smov %s1310_s16 }
 0x181   : > { %s1460_s0 = smov %s1299_s12  ;;  %23 = sbr.rel (!%p21_p11) target bundleno = 12 (0xc), region = 101 }
 0x186   :  { %608 = vsyncpa [#allocation5], 1 }
 0x187   :  { %610 = vsyncpa [#allocation5 + $0x1], 1 }
 0x188   :  { %611 = vsyncpa [#allocation8], 1 }
 0x189   :  { %612 = vsyncpa [#allocation6], 1 }
 0x18a   :  { %614 = vsyncpa [#allocation6 + $0x1], 1 }

// kernel: tpu_custom_call.1
= control target key start
LH: loop header
LB: loop body
LE: loop exit
PB: predicated region body
PF: predicated region fallthrough
CT: control target
= control target key end

     0   :  { %s1425_s0 = inlined_call_operand.<no memory space> [shape: s32[1], index: 0, kind: input, shape index: {}]   ;;  %s1426_s1 = inlined_call_operand.hbm [shape: f32[16,32], index: 1, kind: input, shape index: {}]   ;;  %s1427_s2 = inlined_call_operand.hbm [shape: bf16[1,32,256], index: 2, kind: input, shape index: {}]   ;;  %s1428_s3 = inlined_call_operand.vmem [shape: bf16[1,1,256], index: 3, kind: input, shape index: {}]   ;;  %s1429_s4 = inlined_call_operand.hbm [shape: bf16[1,256,128], index: 4, kind: input, shape index: {}]   ;;  %s1430_s5 = inlined_call_operand.vmem [shape: bf16[1,1,128], index: 5, kind: input, shape index: {}]   ;;  %s1431_s6 = inlined_call_operand.hbm [shape: f32[16,128], index: 6, kind: output, shape index: {}]  }
   0x1   :  { %1436 = sst [smem:[#allocation17_spill]] %s1427_s2 }
   0x2   :  { %1437 = sst [smem:[#allocation18_spill]] %s1431_s6 }
   0x3   :  { %11 = sst [smem:[#allocation3]] %s1425_s0 }
   0x4   :  { %12 = vsyncpa [#allocation5], 0 }
   0x5   :  { %14 = vsyncpa [#allocation5 + $0x1], 0 }
   0x6   :  { %15 = vsyncpa [#allocation8], 0 }
   0x7   :  { %16 = vsyncpa [#allocation6], 0 }
   0x8   :  { %18 = vsyncpa [#allocation6 + $0x1], 0  ;;  %s1192_s23 = smov 0   ;;  %s1194_s24 = smov 0  }
   0x9   :  { %s1196_s25 = smov 0   ;;  %s1198_s26 = smov 0  }
   0xa   :  { %s1200_s27 = smov 0   ;;  %s1202_s28 = smov 0  }
   0xb   :  { %s1204_s29 = smov 0   ;;  %s1206_s0 = smov 0  }
   0xc LB: > { %1438 = sst [smem:[#allocation15_spill]] %s1122_s24  ;;  %s1229_s30 = sadd.s32 4294967295, %s1146_s0   ;;  %s1146_s0 = sphi %s1206_s0, %s1460_s0   ;;  %s1142_s29 = sphi %s1204_s29, %s1459_s29   ;;  %s1138_s28 = sphi %s1202_s28, %s1458_s28   ;;  %s1134_s27 = sphi %s1200_s27, %s1457_s27   ;;  %s1130_s26 = sphi %s1198_s26, %s1411_s26   ;;  %s1126_s25 = sphi %s1196_s25, %s1456_s25   ;;  %s1122_s24 = sphi %s1194_s24, %s1406_s24   ;;  %s1118_s23 = sphi %s1192_s23, %s1455_s23  }
   0xd   : > { %1439 = sst [smem:[#allocation16_spill]] %s1130_s26  ;;  %p1432_p0 = scmp.eq.s32.totalorder %s1229_s30, 0 }
   0xe   : > { %s1231_s7 = sld [smem:[#allocation3]]  ;;  %p72_p1 = scmp.ne.s32.totalorder %s1130_s26, %s1126_s25 }
   0xf   : > { %p128_p2 = scmp.ne.s32.totalorder %s1122_s24, %s1118_s23  ;;  %p711_p3 = scmp.ge.s32.totalorder %s1146_s0, 1 }
  0x10   : > { %p1239_p4 = por %p72_p1, %p1432_p0  ;;  %p193_p5 = scmp.lt.s32.totalorder %s1146_s0, 3 }
  0x11   : > { %p1246_p6 = por %p128_p2, %p1432_p0  ;;  %s1443_s2 = sld [smem:[#allocation17_spill]] }
  0x12   : > { %p1250_p7 = pnand %p711_p3, %p193_p5  ;;  %s1148_s16 = smov [#allocation7]  }
  0x13   : > { %s210_s17 = sshll.u32 %s1148_s16, 4  ;;  %s211_s17 = int_to_ptr.vmem [resolvable:$true] %s210_s17 }
  0x14   : > { %s809_s11 = sshll.u32 %s1231_s7, 5  ;;  %p839_p8 = pneg %p1250_p7 }
  0x16   : > { %p1262_p9 = pnand %p839_p8, %p1239_p4  ;;  %p1268_p10 = pnand %p839_p8, %p1246_p6 }
  0x17   : > { %s207_s14 = scalar_lea.hbm %s1443_s2, %s809_s11  ;;  %s949_s25 = scalar_lea.hbm %s1443_s2, 32 }
  0x18   : > { %s208_s15 = sshll.u32 %s207_s14, 4  ;;  %p946_p13 = pneg %p1262_p9  ;;  %s209_s15 = int_to_ptr.hbm [resolvable:$true] %s208_s15 }
  0x19   : > { %s942_s20 = sshra.s32 %s209_s15, 4  ;;  %s943_s20 = int_to_ptr.hbm [resolvable:$true] %s942_s20 }
  0x1a   : > { %s944_s21 = scalar_lea.hbm %s943_s20, 32  ;;  %p950_p3 = scmp.lt.s32.totalorder %s943_s20, %s1443_s2 }
  0x1b   : > { %p945_p12 = scmp.ne.s32.totalorder %s943_s20, %s944_s21  ;;  %p951_p5 = scmp.lt.s32.totalorder %s949_s25, %s944_s21 }
  0x1d   : > { %p947_p1 = pnand %p946_p13, %p945_p12  ;;  %p952_p8 = por %p951_p5, %p950_p3 }
  0x1f   : > { %p948_p2 = pneg %p947_p1 }
  0x21   : > { %p953_p0 = pnand %p952_p8, %p948_p2 }
  0x23   : > { %956 = shalt.err (!%p953_p0)
}
  0x24   : > { %s1149_s13 = smov 128   ;;  %s1150_s14 = smov 8  }
  0x25   : > { %842 = dma.hbm_to_vmem [thread:$0]  (!%p1262_p9), %s209_s15, 512, %s211_s17, [#allocation8], %s1149_s13, %s1149_s13, %s1150_s14  }
  0x26   : > { %s810_s16 = sshll.u32 %s1231_s7, 7  ;;  %s1151_s6 = smov [#allocation9]  }
  0x27   : > { %s234_s22 = scalar_lea.hbm %s1429_s4, %s810_s16  ;;  %s237_s11 = sshll.u32 %s1151_s6, 4  ;;  %s238_s11 = int_to_ptr.vmem [resolvable:$true] %s237_s11 }
  0x28   : > { %s235_s23 = sshll.u32 %s234_s22, 4  ;;  %p976_p12 = pneg %p1268_p10  ;;  %s236_s23 = int_to_ptr.hbm [resolvable:$true] %s235_s23 }
  0x29   : > { %s972_s20 = sshra.s32 %s236_s23, 4  ;;  %s979_s7 = scalar_lea.hbm %s1429_s4, 128  ;;  %s973_s20 = int_to_ptr.hbm [resolvable:$true] %s972_s20 }
  0x2a   : > { %s974_s21 = scalar_lea.hbm %s973_s20, 128  ;;  %p980_p9 = scmp.lt.s32.totalorder %s973_s20, %s1429_s4 }
  0x2b   : > { %p975_p0 = scmp.ne.s32.totalorder %s973_s20, %s974_s21  ;;  %p981_p2 = scmp.lt.s32.totalorder %s979_s7, %s974_s21 }
  0x2d   : > { %p977_p13 = pnand %p976_p12, %p975_p0  ;;  %p982_p3 = por %p981_p2, %p980_p9 }
  0x2f   : > { %p978_p1 = pneg %p977_p13 }
  0x31   : > { %p983_p5 = pnand %p982_p3, %p978_p1 }
  0x33   : > { %986 = shalt.err (!%p983_p5)
}
  0x34   : > { %s1152_s6 = smov 64   ;;  %s1153_s26 = smov 4  }
  0x35   : > { %845 = dma.hbm_to_vmem [thread:$0]  (!%p1268_p10), %s236_s23, 2048, %s238_s11, [#allocation8], %s1152_s6, %s1152_s6, %s1153_s26  }
  0x36   : > { %s710_s25 = sadd.s32 4294967294, %s1146_s0   ;;  %s1299_s12 = sadd.s32 1, %s1146_s0  }
  0x37   : > { %s28_s13 = ssub.s32 %s1146_s0, %s1299_s12  ;;  %s31_s14 = sadd.s32 1, %s1142_s29 }
  0x38   : > { %p29_p8 = scmp.eq.s32.totalorder %s28_s13, 0  ;;  %p38_p0 = scmp.ne.s32.totalorder %s1142_s29, %s1138_s28 }
  0x39   : > { %p39_p12 = scmp.eq.s32.totalorder %s1146_s0, 0  ;;  %p44_p13 = scmp.ne.s32.totalorder %s1138_s28, %s1134_s27 }
  0x3a   : > { %s1310_s16 = scalar_select %p29_p8, %s1142_s29, %s31_s14  }
  0x3b   : > { %p1312_p1 = por %p39_p12, %p38_p0  ;;  %p1447_p9 = scmp.eq.s32.totalorder %s1229_s30, 0 }
  0x3c   : > { %p180_p2 = scmp.eq.s32.totalorder %s1229_s30, 1  ;;  %p186_p3 = scmp.eq.s32.totalorder %s710_s25, 1 }
  0x3d   : > { %p1318_p10 = por %p1447_p9, %p44_p13  ;;  %p854_p5 = scmp.lt.s32.totalorder %s1146_s0, 2 }
  0x3e   : > { %s259_s23 = sand.u32 1, %s1142_s29   ;;  %p1325_p11 = por %p180_p2, %p38_p0 }
  0x3f   : > { %p1329_p8 = por %p186_p3, %p44_p13  ;;  %s717_s21 = sshll.u32 %s259_s23, 3 }
  0x40   : > { %s718_s18 = sshll.u32 %s1146_s0, 3  ;;  %s263_s24 = scalar_lea.vmem [#allocation4], %s717_s21 }
  0x41   : > { %s1450_s20 = scalar_select %p1329_p8, 1, 0 }
  0x42   : > { %s267_s17 = scalar_lea.hbm %s1426_s1, %s718_s18  ;;  %s271_s6 = sshll.u32 %s263_s24, 4  ;;  %s272_s6 = int_to_ptr.vmem [resolvable:$true] %s271_s6 }
  0x43   : > { %s269_s26 = sshll.u32 %s267_s17, 4  ;;  %p1339_p0 = pnand %p854_p5, %p1312_p1  ;;  %s270_s26 = int_to_ptr.hbm [resolvable:$true] %s269_s26 }
  0x44   : > { %s260_s13 = scalar_lea.sflag [#allocation5], %s259_s23  ;;  %s1002_s14 = sshra.s32 %s270_s26, 4  ;;  %s1003_s14 = int_to_ptr.hbm [resolvable:$true] %s1002_s14 }
  0x45   : > { %s1004_s2 = scalar_lea.hbm %s1003_s14, 8  ;;  %p1006_p13 = pneg %p1339_p0 }
  0x46   : > { %p1005_p12 = scmp.ne.s32.totalorder %s1003_s14, %s1004_s2  ;;  %s1009_s15 = scalar_lea.hbm %s1426_s1, 16 }
  0x47   : > { %p1010_p1 = scmp.lt.s32.totalorder %s1003_s14, %s1426_s1  ;;  %p1011_p3 = scmp.lt.s32.totalorder %s1009_s15, %s1004_s2 }
  0x48   : > { %p1007_p9 = pnand %p1006_p13, %p1005_p12 }
  0x49   : > { %p1012_p5 = por %p1011_p3, %p1010_p1 }
  0x4a   : > { %p1008_p2 = pneg %p1007_p9 }
  0x4c   : > { %p1013_p8 = pnand %p1012_p5, %p1008_p2 }
  0x4e   : > { %1016 = shalt.err (!%p1013_p8)
}
  0x4f   : > { %849 = dma.hbm_to_vmem [thread:$0]  (!%p1339_p0), %s270_s26, 128, %s272_s6, %s260_s13  }
  0x50   : > { %280 = sbr.rel (%p1250_p7) target bundleno = 373 (0x175), region = 40  ;;  %s1356_s23 = sand.u32 (!%p1250_p7), 1, %s1138_s28  }
  0x51   : > { %s720_s17 = sshll.u32 (!%p1250_p7), %s1356_s23, 3  ;;  %s283_s24 = scalar_lea.sflag (!%p1250_p7), [#allocation5], %s1356_s23 }
  0x52   : > { %s286_s2 = scalar_lea.vmem (!%p1250_p7), [#allocation4], %s720_s17 }
  0x55   : > { %1101 = dma.done.wait (%p1318_p10), %s283_s24, 128  }
  0x56   : > { %1103 = vsyncadd (%p1318_p10), %s283_s24, 4294967168 }
  0x57   : > { %1105 = dma.done.wait (%p1239_p4), [#allocation8], 512  }
  0x58   : > { %1107 = vsyncadd (%p1239_p4), [#allocation8], 4294966784 }
  0x59   : > { %1109 = dma.done.wait (%p1246_p6), [#allocation8], 2048  }
  0x5a   : > { %1111 = vsyncadd (%p1246_p6), [#allocation8], 4294965248  ;;  %v733_v0 = vld [vmem:[#allocation7 + $0x10] sm:$0xf]  ;;  %v814_v1 = vld [vmem:[#allocation7 + $0x14] sm:$0xf0] }
  0x5b   : > { %v813_v2 = vld [vmem:[#allocation7 + $0x14] sm:$0xf]  ;;  %v734_v3 = vor.u32 %v814_v1, %v733_v0  ;;  %v735_v4 = vld [vmem:[#allocation7 + $0x18] sm:$0xf0]  ;;  %v725_v5 = vld [vmem:[#allocation7] sm:$0xf] }
  0x5c   : > { %v812_v6 = vld [vmem:[#allocation7 + $0x4] sm:$0xf0]  ;;  %v738_v7 = vor.u32 %v813_v2, %v735_v4  ;;  %v811_v8 = vld [vmem:[#allocation7 + $0x4] sm:$0xf]  ;;  %v727_v9 = vld [vmem:[#allocation7 + $0x8] sm:$0xf0] }
  0x5d   : > { %392 = vmatpush.bf16.msra.mxu0 %v734_v3  ;;  %v726_v10 = vor.u32 %v812_v6, %v725_v5  ;;  %v347_v11 = vld [vmem:[%s286_s2] sm:$0xff]  ;;  %v730_v14 = vor.u32 %v811_v8, %v727_v9  ;;  %vm382_vm0 = vcmask 261120   ;;  %v820_v18 = vld [vmem:[#allocation9 + $0x28] sm:$0xff]  ;;  %v819_v20 = vld [vmem:[#allocation9 + $0x20] sm:$0xff]  ;;  %s334_s8 = sld [smem:[#allocation3]]  ;;  %s806_s14 = sshll.u32 %s1229_s30, 3 }
  0x5e   : > { %v822_v12 = vld [vmem:[#allocation9 + $0x38] sm:$0xff]  ;;  %405 = vmatpush.bf16.msra.mxu1 %v738_v7  ;;  %v821_v15 = vld [vmem:[#allocation9 + $0x30] sm:$0xff]  ;;  %v348_v17 = vpack.c.bf16 %v347_v11, %v347_v11  ;;  %v828_v19 = vld [vmem:[#allocation9 + $0x68] sm:$0xff]  ;;  %s1452_s15 = sld [smem:[#allocation18_spill]]  ;;  %s332_s22 = scalar_lea.vmem [#allocation10], %s720_s17 }
  0x5f   : > { %v830_v13 = vld [vmem:[#allocation9 + $0x78] sm:$0xff]  ;;  %547 = vmatpush.bf16.msra.mxu2 %v822_v12  ;;  %v829_v16 = vld [vmem:[#allocation9 + $0x70] sm:$0xff]  ;;  %v827_v21 = vld [vmem:[#allocation9 + $0x60] sm:$0xff]  ;;  %s587_s24 = sshll.u32 %s332_s22, 4  ;;  %s588_s24 = int_to_ptr.vmem [resolvable:$true] %s587_s24 }
  0x60   : > { %560 = vmatpush.bf16.msra.mxu3 %v830_v13  ;;  %v818_v22 = vld [vmem:[#allocation9 + $0x18] sm:$0xff]  ;;  %v817_v24 = vld [vmem:[#allocation9 + $0x10] sm:$0xff]  ;;  %v816_v26 = vld [vmem:[#allocation9 + $0x8] sm:$0xff] }
  0x61   : > { %393 = vmatpush.bf16.msra.mxu0 %v726_v10  ;;  %v826_v23 = vld [vmem:[#allocation9 + $0x58] sm:$0xff]  ;;  %v825_v25 = vld [vmem:[#allocation9 + $0x50] sm:$0xff]  ;;  %v824_v27 = vld [vmem:[#allocation9 + $0x48] sm:$0xff] }
  0x62   : > { %406 = vmatpush.bf16.msra.mxu1 %v730_v14  ;;  %v815_v28 = vld [vmem:[#allocation9] sm:$0xff] }
  0x63   : > { %548 = vmatpush.bf16.msra.mxu2 %v821_v15  ;;  %v823_v29 = vld [vmem:[#allocation9 + $0x40] sm:$0xff]  ;;  %p335_p4 = scmp.lt.s32.totalorder %s334_s8, 0 }
  0x64   : > { %561 = vmatpush.bf16.msra.mxu3 %v829_v16  ;;  %739 = vmatmul.msk.bf16.vlgmr.msra.gmra.mxu0 %vm382_vm0, %v348_v17  ;;  %s585_s7 = scalar_lea.hbm %s1452_s15, %s806_s14  ;;  %s1052_s17 = scalar_lea.hbm %s1452_s15, 16 }
  0x65   : > { %740 = vmatmul.msk.bf16.vlgmr.msra.gmra.mxu1 %vm382_vm0, %v348_v17  ;;  %s1462_s8 = smov (!%p335_p4, %s334_s8), 0  ;;  %s589_s2 = sshll.u32 %s585_s7, 4  ;;  %s590_s2 = int_to_ptr.hbm [resolvable:$true] %s589_s2 }
  0x66   : > { %s722_s9 = sshll.u32 %s1462_s8, 1  ;;  %s344_s13 = scalar_lea.vmem %s1430_s5, %s1462_s8 }
  0x67   : > { %549 = vmatpush.bf16.msra.mxu2 %v820_v18  ;;  %s338_s6 = scalar_lea.vmem %s1428_s3, %s722_s9  ;;  %v448_v46 = vld [vmem:[%s344_s13] sm:$0x1]  ;;  %s575_s8 = scalar_lea.sflag [#allocation6], %s1356_s23 }
  0x68   : > { %562 = vmatpush.bf16.msra.mxu3 %v828_v19  ;;  %v353_v30 = vld [vmem:[%s338_s6] sm:$0x3]  ;;  %v449_v47 = vunpack.c.l.bf16 %v448_v46  ;;  %s1046_s9 = sshra.s32 %s590_s2, 4  ;;  %s1047_s9 = int_to_ptr.hbm [resolvable:$true] %s1046_s9 }
  0x69   : > { %v354_v31 = vunpack.c.l.bf16 %v353_v30  ;;  %s1048_s30 = scalar_lea.hbm %s1047_s9, 8  ;;  %p1053_p8 = scmp.lt.s32.totalorder %s1047_s9, %s1452_s15 }
  0x6a   : > { %v450_v48 = vperm.slane %v449_v47, 0  ;;  %p1049_p6 = scmp.ne.s32.totalorder %s1047_s9, %s1048_s30  ;;  %p1054_p0 = scmp.lt.s32.totalorder %s1052_s17, %s1048_s30 }
  0x6b   : > { %550 = vmatpush.bf16.msra.mxu2 %v819_v20  ;;  %v356_v32 = vperm.slane %v354_v31, 0  ;;  %v357_v33 = vperm.slane %v354_v31, 2 }
  0x6c   : > { %563 = vmatpush.bf16.msra.mxu3 %v827_v21  ;;  %p1050_p7 = pnand %p1049_p6, %p1325_p11  ;;  %p1055_p12 = por %p1054_p0, %p1053_p8 }
  0x6d   : > { %v360_v34 = vperm.slane %v356_v32, 0  ;;  %v361_v35 = vperm.slane %v357_v33, 0 }
  0x6e   : > { %p1051_p10 = pneg %p1050_p7 }
  0x6f   : > { %551 = vmatpush.bf16.msra.mxu2 %v818_v22 }
  0x70   : > { %564 = vmatpush.bf16.msra.mxu3 %v826_v23  ;;  %p1056_p13 = pnand %p1055_p12, %p1051_p10 }
  0x73   : > { %552 = vmatpush.bf16.msra.mxu2 %v817_v24 }
  0x74   : > { %565 = vmatpush.bf16.msra.mxu3 %v825_v25 }
  0x77   : > { %553 = vmatpush.bf16.msra.mxu2 %v816_v26 }
  0x78   : > { %566 = vmatpush.bf16.msra.mxu3 %v824_v27 }
  0x7b   : > { %554 = vmatpush.bf16.msra.mxu2 %v815_v28 }
  0x7c   : > { %567 = vmatpush.bf16.msra.mxu3 %v823_v29 }
  0xe1   : > { %v395_v36 = vpop.f32.mrf.mxu0 }
  0xe2   : > { %v396_v37 = vadd.f32 %v395_v36, %v360_v34  ;;  %v408_v38 = vpop.f32.mrf.mxu1 }
  0xe3   : > { %v409_v39 = vadd.f32 %v408_v38, %v361_v35 }
  0xe4   : > { %v412_v40 = vmax.f32 %v396_v37, 0.0 }
  0xe5   : > { %v413_v41 = vmax.f32 %v409_v39, 0.0 }
  0xe6   : > { %v414_v42 = vpack.c.bf16 %v412_v40, %v412_v40 }
  0xe7   : > { %v415_v43 = vpack.c.bf16 %v413_v41, %v413_v41 }
  0xe8   : > { %555 = vmatmul.bf16.vlgmr.msra.gmra.mxu2 %v414_v42 }
  0xe9   : > { %568 = vmatmul.bf16.vlgmr.msra.gmra.mxu3 %v415_v43  ;;  %v397_v44 = vpop.f32.mrf.mxu0 }
  0xea   : > { %v410_v45 = vpop.f32.mrf.mxu1 }
 0x16b   : > { %v556_v49 = vpop.f32.mrf.mxu2 }
 0x16c   : > { %v557_v50 = vadd.f32 %v556_v49, %v450_v48  ;;  %v569_v51 = vpop.f32.mrf.mxu3 }
 0x16e   : > { %v570_v52 = vadd.f32 %v569_v51, %v557_v50 }
 0x170   : > { %573 = vst [vmem:[%s332_s22] sm:$0xff] %v570_v52 }
 0x171   : > { %1059 = shalt.err (!%p1056_p13)
}
 0x172   : > { %837 = dma.vmem_to_hbm [thread:$0]  (%p1325_p11), %s588_s24, 128, %s590_s2, %s575_s8  }
 0x173   : > { %v558_v53 = vpop.f32.mrf.mxu2 }
 0x174   : > { %v571_v54 = vpop.f32.mrf.mxu3 }
 0x175 PF: > { %s601_s23 = sand.u32 1, %s1134_s27   ;;  %p1453_p9 = scmp.ne.s32.totalorder %s1450_s20, 0 }
 0x176   : > { %p1454_p2 = scmp.ge.s32.totalorder %s1146_s0, 2  ;;  %s602_s25 = scalar_lea.sflag [#allocation6], %s601_s23 }
 0x178   : > { %p851_p1 = pnand %p1454_p2, %p1453_p9 }
 0x17a   : > { %p852_p3 = pneg %p851_p1 }
 0x17c   : > { %1113 = dma.done.wait (%p852_p3), %s602_s25, 128  }
 0x17d   : > { %1115 = vsyncadd (%p852_p3), %s602_s25, 4294967168  ;;  %s1455_s23 = sld [smem:[#allocation15_spill]]  ;;  %p21_p11 = scmp.ge.s32.totalorder %s1299_s12, 4  }
 0x17e   : > { %s1456_s25 = sld [smem:[#allocation16_spill]]  ;;  %s1406_s24 = smov 0  }
 0x17f   : > { %s1411_s26 = smov 0   ;;  %s1457_s27 = smov %s1138_s28 }
 0x180   : > { %s1458_s28 = smov %s1142_s29  ;;  %s1459_s29 = smov %s1310_s16 }
 0x181   : > { %s1460_s0 = smov %s1299_s12  ;;  %23 = sbr.rel (!%p21_p11) target bundleno = 12 (0xc), region = 101 }
 0x186   :  { %608 = vsyncpa [#allocation5], 1 }
 0x187   :  { %610 = vsyncpa [#allocation5 + $0x1], 1 }
 0x188   :  { %611 = vsyncpa [#allocation8], 1 }
 0x189   :  { %612 = vsyncpa [#allocation6], 1 }
 0x18a   :  { %614 = vsyncpa [#allocation6 + $0x1], 1 }

</bundles_post_ra>
